<compile_context>
chip_gen: v7x
topology: tpu7x:2x2x1
jax: 0.10.0
libtpu: 0.0.40
codegen_flags: <defaults>
</compile_context>

<pallas_src>
import jax
import jax.numpy as jnp
from jax.experimental import pallas as pl
from jax.experimental.pallas import tpu as pltpu


_TARGET_BLOCK_BYTES = 4 * 1024 * 1024      # ~4 MiB f32 input block per grid step


def brain_kernel(x_ref, scale_ref, bias_ref, o_ref):
    # x_ref: (TB, TL); scale_ref/bias_ref: (1, TL) -> broadcast over rows.
    ys = x_ref[...] * scale_ref[...] + bias_ref[...]
    # sigmoid(ys) == 0.5 * (tanh(0.5 * ys) + 1): single EUP op per element.
    o_ref[...] = 0.5 * (jnp.tanh(0.5 * ys) + 1.0)


def _choose_block_rows(rows, lane_block):
    """Rows per grid step: ~_TARGET_BLOCK_BYTES per f32 block, multiple of 8,
    >=2 grid steps for medium/large problems (v7x megacore), and a divisor of
    `rows` when one is nearby (full, unmasked final tile)."""
    cap = max(8, (_TARGET_BLOCK_BYTES // (lane_block * 4)) // 8 * 8)
    if rows <= cap:
        if rows < 128:
            return rows                              # tiny: one full-extent block
        cap = min(cap, ((rows + 15) // 16) * 8)      # ~rows/2 -> >=2 grid steps
    lo = max(8, (cap // 2) // 8 * 8)
    for t in range(cap, lo - 1, -8):                 # prefer exact divisor of rows
        if rows % t == 0:
            return t
    return cap                                       # masked final tile (handled by Pallas)


def brain_forward(x, w_edges, b_edges):
    """x: (..., F_in) float32; w_edges, b_edges: (F_in, F_out) float32."""
    in_features, out_features = w_edges.shape
    lead = x.shape[:-1]
    f_in = x.shape[-1]

    # Wrapper-side edge reductions: sum over the in_features (edge) axis.
    w_sum = jnp.sum(w_edges, axis=0)                 # (F_out,)
    b_sum = jnp.sum(b_edges, axis=0)                 # (F_out,)

    x2d = x.reshape(-1, f_in)                        # free reshape of leading dims
    batch = x2d.shape[0]

    if out_features % 128 == 0:
        # Fast path: layout is already lane-dense.  No repack / no wrapper copy:
        # the x BlockSpec simply reads columns [0, F_out) of the (B, F_in) array.
        lanes, rows = out_features, batch
        x_in = x2d
        scale = w_sum.reshape(1, lanes)
        bias = b_sum.reshape(1, lanes)
        f_pad = out_features
        b_rows = batch
    else:
        x_used = x2d if f_in == out_features else x2d[:, :out_features]
        if out_features < 128:
            # Pad F_out to the next power of two (divides 128), then fold batch
            # rows into a wide lane axis.
            f_pad = max(1, 1 << (out_features - 1).bit_length())
            lanes = 128
            for cand in (1024, 512, 256):            # wider slab when there is data
                if batch * f_pad >= 8 * cand:
                    lanes = cand
                    break
            rep = lanes // f_pad
        else:
            # F_out > 128 and not a multiple of 128: pad up to a multiple of 128.
            f_pad = pl.cdiv(out_features, 128) * 128
            lanes, rep = f_pad, 1
        w_pad = jnp.pad(w_sum, (0, f_pad - out_features))
        b_pad = jnp.pad(b_sum, (0, f_pad - out_features))
        b_rows = pl.cdiv(batch, rep) * rep
        pad_r, pad_c = b_rows - batch, f_pad - out_features
        if pad_r or pad_c:                           # single fused pad (skipped if unneeded)
            x_used = jnp.pad(x_used, ((0, pad_r), (0, pad_c)))
        rows = (b_rows * f_pad) // lanes
        x_in = x_used.reshape(rows, lanes)           # row-major, layout-preserving
        scale = jnp.tile(w_pad, rep).reshape(1, lanes)
        bias = jnp.tile(b_pad, rep).reshape(1, lanes)

    # Lane tile (only kicks in for extremely wide F_out) and VMEM-aware row tile.
    max_tl = (_TARGET_BLOCK_BYTES // (8 * 4)) // 128 * 128
    tl = lanes if lanes <= max_tl else max_tl
    tb = _choose_block_rows(rows, tl)
    grid = (pl.cdiv(rows, tb), pl.cdiv(lanes, tl))

    n_elem = rows * lanes
    out2 = pl.pallas_call(
        brain_kernel,
        # f32 output to match the reference; switch to bf16 if downstream tolerates
        # it (halves store-side HBM traffic).
        out_shape=jax.ShapeDtypeStruct((rows, lanes), jnp.float32),
        grid=grid,
        in_specs=[
            pl.BlockSpec((tb, tl), lambda i, j: (i, j)),
            pl.BlockSpec((1, tl), lambda i, j: (0, j)),
            pl.BlockSpec((1, tl), lambda i, j: (0, j)),
        ],
        out_specs=pl.BlockSpec((tb, tl), lambda i, j: (i, j)),
        compiler_params=pltpu.CompilerParams(
            dimension_semantics=("parallel", "parallel"),
            vmem_limit_bytes=48 * 1024 * 1024,
        ),
        cost_estimate=pl.CostEstimate(
            flops=5 * n_elem,                # mul, add, scale, add, scale
            transcendentals=n_elem,          # one tanh per element
            bytes_accessed=2 * n_elem * 4 + 2 * lanes * 4,
        ),
    )(x_in, scale, bias)

    if out_features % 128 == 0:
        out = out2                                   # already (B, F_out)
    else:
        out = out2.reshape(b_rows, f_pad)[:batch, :out_features]
    return out.reshape(lead + (out_features,))


def brain_reference(x, w_edges, b_edges):
    out_features = w_edges.shape[1]
    w_sum = jnp.sum(w_edges, axis=0)
    b_sum = jnp.sum(b_edges, axis=0)
    ys = x[..., :out_features] * w_sum + b_sum
    return jax.nn.sigmoid(ys)


def _run_case(key, batch, in_features, out_features):
    kx, kw, kb = jax.random.split(key, 3)
    x = jax.random.normal(kx, (batch, in_features), dtype=jnp.float32)
    # Brain._init sets every cell weight to 1/out_features and bias to 0; add a
    # small deterministic perturbation so the edge reduction is nontrivial.
    init_w = 1.0 / out_features
    w_edges = init_w + 0.01 * jax.random.normal(
        kw, (in_features, out_features), dtype=jnp.float32)
    b_edges = 0.01 * jax.random.normal(
        kb, (in_features, out_features), dtype=jnp.float32)

    y = jax.block_until_ready(brain_forward(x, w_edges, b_edges))
    y_ref = brain_reference(x, w_edges, b_edges)
    assert y.shape == (batch, out_features)
    assert jnp.allclose(y, y_ref, atol=1e-5, rtol=1e-5), (
        f"mismatch vs reference for F_out={out_features}")


if __name__ == "__main__":
    key = jax.random.PRNGKey(0)
    k0, k1, k2 = jax.random.split(key, 3)

    # Main small case consistent with Brain(in_features, out_features).
    _run_case(k0, batch=2, in_features=32, out_features=8)
    # Padded fallback path (F_out not a divisor of 128), like the default F_out=10.
    _run_case(k1, batch=3, in_features=20, out_features=10)
    # Lane-dense fast path (F_out a multiple of 128, x sliced by the BlockSpec).
    _run_case(k2, batch=2, in_features=300, out_features=128)

    # TODO(synk): Brain.extinction / NeuralCellEdge.create/delete/update mutate
    # the module's cell lists (host-side structural state); they are control
    # logic outside the forward pass and are not kernelized here.

    print("KERNEL_OK")
</pallas_src>

<mosaic_0001>
module attributes {stable_mosaic.version = 11 : i64} {
  func.func @brain_kernel(%arg0: i32, %arg1: i32, %arg2: memref<1x128xf32, #tpu.memory_space<vmem>>, %arg3: memref<1x128xf32, #tpu.memory_space<vmem>>, %arg4: memref<1x128xf32, #tpu.memory_space<vmem>>, %arg5: memref<1x128xf32, #tpu.memory_space<vmem>>) attributes {dimension_semantics = [#tpu.dimension_semantics<parallel>, #tpu.dimension_semantics<parallel>], iteration_bounds = array<i64: 1, 1>, scalar_prefetch = 0 : i64, scratch_operands = 0 : i64, tpu.core_type = #tpu.core_type<tc>, window_params = [{transform_indices = @transform_0, window_bounds = array<i64: 1, 128>}, {transform_indices = @transform_1, window_bounds = array<i64: 1, 128>}, {transform_indices = @transform_2, window_bounds = array<i64: 1, 128>}, {transform_indices = @transform_3, window_bounds = array<i64: 1, 128>}]} {
    %c0 = arith.constant 0 : index
    %c0_0 = arith.constant 0 : index
    %0 = vector.load %arg2[%c0, %c0_0] : memref<1x128xf32, #tpu.memory_space<vmem>>, vector<1x128xf32>
    %c0_1 = arith.constant 0 : index
    %c0_2 = arith.constant 0 : index
    %1 = vector.load %arg3[%c0_1, %c0_2] : memref<1x128xf32, #tpu.memory_space<vmem>>, vector<1x128xf32>
    %2 = arith.mulf %0, %1 : vector<1x128xf32>
    %c0_3 = arith.constant 0 : index
    %c0_4 = arith.constant 0 : index
    %3 = vector.load %arg4[%c0_3, %c0_4] : memref<1x128xf32, #tpu.memory_space<vmem>>, vector<1x128xf32>
    %4 = arith.addf %2, %3 : vector<1x128xf32>
    %cst = arith.constant 5.000000e-01 : f32
    %5 = vector.broadcast %cst : f32 to vector<1x128xf32>
    %6 = arith.mulf %5, %4 : vector<1x128xf32>
    %7 = math.tanh %6 : vector<1x128xf32>
    %cst_5 = arith.constant 1.000000e+00 : f32
    %8 = vector.broadcast %cst_5 : f32 to vector<1x128xf32>
    %9 = arith.addf %7, %8 : vector<1x128xf32>
    %cst_6 = arith.constant 5.000000e-01 : f32
    %10 = vector.broadcast %cst_6 : f32 to vector<1x128xf32>
    %11 = arith.mulf %10, %9 : vector<1x128xf32>
    %c0_7 = arith.constant 0 : index
    %c0_8 = arith.constant 0 : index
    %12 = vector.load %arg5[%c0_7, %c0_8] : memref<1x128xf32, #tpu.memory_space<vmem>>, vector<1x128xf32>
    tpu.vector_store %arg5[%c0_7, %c0_8], %11 {strides = array<i32>} : memref<1x128xf32, #tpu.memory_space<vmem>>, vector<1x128xf32>,
    return
  }
  func.func @transform_0(%arg0: i32, %arg1: i32) -> (i32, i32) {
    %c0_i32 = arith.constant 0 : i32
    return %arg0, %arg1 : i32, i32
  }
  func.func @transform_1(%arg0: i32, %arg1: i32) -> (i32, i32) {
    %c0_i32 = arith.constant 0 : i32
    %c0_i32_0 = arith.constant 0 : i32
    return %c0_i32, %arg1 : i32, i32
  }
  func.func @transform_2(%arg0: i32, %arg1: i32) -> (i32, i32) {
    %c0_i32 = arith.constant 0 : i32
    %c0_i32_0 = arith.constant 0 : i32
    return %c0_i32, %arg1 : i32, i32
  }
  func.func @transform_3(%arg0: i32, %arg1: i32) -> (i32, i32) {
    %c0_i32 = arith.constant 0 : i32
    return %arg0, %arg1 : i32, i32
  }
}

</mosaic_0001>

<bundles_post_ra>
// kernel: tpu_custom_call.1
= control target key start
LH: loop header
LB: loop body
LE: loop exit
PB: predicated region body
PF: predicated region fallthrough
CT: control target
= control target key end

     0   :  { %8 = vsyncpa [#allocation3], 0  ;;  %s156_s0 = inlined_call_operand.hbm [shape: f32[1,128], index: 0, kind: input, shape index: {}]   ;;  %s157_s1 = inlined_call_operand.vmem [shape: f32[1,128], index: 1, kind: input, shape index: {}]   ;;  %s158_s2 = inlined_call_operand.vmem [shape: f32[1,128], index: 2, kind: input, shape index: {}]   ;;  %s159_s3 = inlined_call_operand.hbm [shape: f32[1,128], index: 3, kind: output, shape index: {}]  }
   0x1   :  { %9 = vsyncpa [#allocation4], 0  ;;  %s104_s12 = smov [#allocation2]   ;;  %s56_s16 = scalar_lea.hbm %s156_s0, 16 }
   0x2   :  { %s16_s13 = sshll.u32 %s104_s12, 4  ;;  %p57_p0 = scmp.ne.s32.totalorder %s156_s0, %s56_s16  ;;  %s17_s13 = int_to_ptr.vmem [resolvable:$true] %s16_s13 }
   0x3   :  { %p60_p1 = scmp.lt.u32.totalorder %s56_s16, %s156_s0 }
   0x5   :  { %p62_p2 = pnand %p60_p1, %p57_p0 }
   0x7   :  { %65 = shalt.err (!%p62_p2)
}
   0x8   :  { %s66_s21 = scalar_lea.vmem %s17_s13, 16  ;;  %s70_s22 = scalar_lea.vmem %s17_s13, 32 }
   0x9   :  { %p67_p3 = scmp.ne.s32.totalorder %s17_s13, %s66_s21  ;;  %p71_p4 = scmp.lt.s32.totalorder %s17_s13, %s17_s13 }
   0xa   :  { %p72_p5 = scmp.lt.s32.totalorder %s70_s22, %s66_s21 }
   0xc   :  { %p73_p6 = por %p72_p5, %p71_p4 }
   0xe   :  { %p74_p7 = pnand %p73_p6, %p67_p3 }
  0x10   :  { %77 = shalt.err (!%p74_p7)
}
  0x11   :  { %19 = dma.hbm_to_vmem [thread:$0]  %s156_s0, 16, %s17_s13, [#allocation3]  }
  0x12   :  { %100 = dma.done.wait [#allocation3], 16  }
  0x13   :  { %101 = vsyncadd [#allocation3], 4294967280  ;;  %v27_v0 = vld [vmem:[#allocation2] sm:$0x1]  ;;  %s105_s29 = smov [#allocation5]  }
  0x14   :  { %v28_v1 = vld [vmem:[%s157_s1] sm:$0x1]  ;;  %s43_s30 = sshll.u32 %s105_s29, 4  ;;  %s44_s30 = int_to_ptr.vmem [resolvable:$true] %s43_s30 }
  0x15   :  { %v30_v2 = vld [vmem:[%s158_s2] sm:$0x1]  ;;  %v29_v3 = vmul.f32 %v28_v1, %v27_v0  ;;  %s78_s0 = scalar_lea.vmem %s44_s30, 16  ;;  %s82_s4 = scalar_lea.vmem %s44_s30, 32 }
  0x16   :  { %p79_p8 = scmp.ne.s32.totalorder %s44_s30, %s78_s0  ;;  %p83_p9 = scmp.lt.s32.totalorder %s44_s30, %s44_s30 }
  0x17   :  { %v31_v4 = vadd.f32 %v30_v2, %v29_v3  ;;  %p84_p10 = scmp.lt.s32.totalorder %s82_s4, %s78_s0 }
  0x19   :  { %v32_v5 = vmul.f32 0.5, %v31_v4  ;;  %p85_p11 = por %p84_p10, %p83_p9 }
  0x1b   :  { %54 = vtanh.f32 %v32_v5  ;;  %p86_p12 = pnand %p85_p11, %p79_p8 }
  0x25   :  { %v55_v6 = vpop.eup %54 }
  0x26   :  { %v34_v7 = vadd.f32 1.0, %v55_v6 }
  0x28   :  { %v35_v8 = vmul.f32 0.5, %v34_v7 }
  0x2a   :  { %36 = vst [vmem:[#allocation5] sm:$0x1] %v35_v8 }
  0x2b   :  { %89 = shalt.err (!%p86_p12)
}
  0x2c   :  { %s90_s5 = scalar_lea.hbm %s159_s3, 16 }
  0x2d   :  { %p91_p13 = scmp.ne.s32.totalorder %s159_s3, %s90_s5  ;;  %p94_p0 = scmp.lt.u32.totalorder %s90_s5, %s159_s3 }
  0x2f   :  { %p96_p1 = pnand %p94_p0, %p91_p13 }
  0x31   :  { %99 = shalt.err (!%p96_p1)
}
  0x32   :  { %46 = dma.vmem_to_hbm [thread:$0]  %s44_s30, 16, %s159_s3, [#allocation4]  }
  0x33   :  { %102 = dma.done.wait [#allocation4], 16  }
  0x34   :  { %103 = vsyncadd [#allocation4], 4294967280 }
  0x35   :  { %50 = vsyncpa [#allocation3], 1 }
  0x36   :  { %51 = vsyncpa [#allocation4], 1 }

</bundles_post_ra>
